<compile_context>
chip_gen: v7x
topology: tpu7x:2x2x1
jax: 0.10.0
libtpu: 0.0.40
codegen_flags: <defaults>
</compile_context>

<pallas_src>
import functools

import jax
import jax.numpy as jnp
import numpy as np
from jax.experimental import pallas as pl
from jax.experimental.pallas import tpu as pltpu

_DEFAULT_BLOCK_BYTES = 2 * 1024 * 1024   # ~2 MiB of input per grid step
_VMEM_LIMIT_BYTES = 48 * 1024 * 1024     # < 64 MiB (v7x physical), > 32 MiB default


def _cdiv(a, b):
    return -(-a // b)


def _round_up(a, b):
    return _cdiv(a, b) * b


@functools.lru_cache(maxsize=None)
def _roll_sense():
    """Probe pltpu.roll's direction once.

    Returns `sense` such that pltpu.roll(x, (sense*d) % n, axis=-1)[q] == x[q+d]
    for 0 <= q+d < n, so the host-precomputed masks stay correct regardless of
    the rotate convention."""
    def probe(x_ref, o_ref):
        o_ref[...] = pltpu.roll(x_ref[...], shift=1, axis=1)

    x = np.arange(8 * 128, dtype=np.float32).reshape(8, 128)
    with jax.ensure_compile_time_eval():
        got = np.asarray(
            pl.pallas_call(
                probe, out_shape=jax.ShapeDtypeStruct((8, 128), jnp.float32)
            )(jnp.asarray(x)))
    if np.array_equal(got, np.roll(x, 1, axis=1)):    # roll(x, s)[q] == x[q - s]
        return -1
    if np.array_equal(got, np.roll(x, -1, axis=1)):   # roll(x, s)[q] == x[q + s]
        return 1
    raise RuntimeError("unexpected pltpu.roll semantics")


@functools.lru_cache(maxsize=None)
def _bf16_compute_ok():
    # bf16 compute is a win on v6e/v7x; v5e has no bf16 VPU, keep f32 there.
    try:
        kind = jax.devices()[0].device_kind.lower()
    except Exception:
        return True
    return not any(t in kind for t in ("v5 lite", "v5e", "v5litepod"))


def _build_aux(h, w, hwp, strel, sense, dtype):
    """Host-side precompute of the kernel aux array.

    Rows (in consumption order): one {0, -inf} validity-bias row per W-axis
    shift, one per H-axis shift, and (even strel only) a trailing {1, 0}
    interior multiplier row implementing the fused ZeroPad2d.  Masks are exact
    per flattened position, so boundaries / lane padding / plane wrap are all
    handled with no in-kernel index math."""
    hw = h * w
    k = strel // 2
    if strel % 2 == 1:
        offs = [d for d in range(-k, k + 1) if d != 0]   # OOB neighbors ignored
    else:
        offs = [d for d in range(-k, k) if d != 0]       # valid-pool window

    q = np.arange(hwp)
    row_i = q // w
    col_i = q % w
    real = q < hw                                        # padded lanes invalid

    rows, w_shifts, h_shifts = [], [], []
    for d in offs:                                       # W axis, flat stride 1
        valid = real & (col_i + d >= 0) & (col_i + d < w)
        rows.append(np.where(valid, 0.0, -np.inf))
        w_shifts.append(int((sense * d) % hwp))
    for d in offs:                                       # H axis, flat stride w
        valid = real & (row_i + d >= 0) & (row_i + d < h)
        rows.append(np.where(valid, 0.0, -np.inf))
        h_shifts.append(int((sense * d * w) % hwp))

    interior_row = None
    if strel % 2 == 0:                                   # fused ZeroPad2d mask
        interior = (real & (row_i >= k) & (row_i <= k + h - strel)
                    & (col_i >= k) & (col_i <= k + w - strel))
        interior_row = len(rows)
        rows.append(np.where(interior, 1.0, 0.0))

    if not rows:                                         # strel == 1
        rows.append(np.zeros(hwp))

    aux = jnp.asarray(np.stack(rows), dtype=dtype)
    return aux, tuple(w_shifts), tuple(h_shifts), interior_row


def _plane_tiling(p, bytes_per_plane, target_bytes):
    """Return (p_padded, planes_per_block): multiple-of-8 sublane blocks under
    the per-step byte budget, preferring an even number of grid steps so the
    "parallel" axis balances across 2 TensorCores (v7x megacore)."""
    cap = max(8, (target_bytes // max(bytes_per_plane, 1)) // 8 * 8)
    if p <= cap:
        pb = _round_up(p, 8)
        return pb, pb
    steps = _cdiv(p, cap)
    if steps % 2:
        steps += 1
    pb = _round_up(_cdiv(p, steps), 8)
    return pb * steps, pb


def _morpho_grad_kernel(aux_ref, x_ref, o_ref, *, w_shifts, h_shifts,
                        interior_row, compute_dtype):
    """Morphological gradient on a block of flattened planes (Pb, HWp).

    Only rolls (XLU), adds and max/min (VPU) — all masks come precomputed from
    aux_ref.  -inf-biased candidates never win a max; +inf never wins a min."""
    x = x_ref[...].astype(compute_dtype)
    pb = x.shape[0]

    # ---- W pass: one shared roll per column offset, reused for max and min.
    w_max = x
    w_min = x
    row = 0
    for s in w_shifts:
        bias = aux_ref[row:row + 1, :]                  # (1, HWp): 0 / -inf
        r = pltpu.roll(x, shift=s, axis=1)
        w_max = jnp.maximum(w_max, r + bias)
        w_min = jnp.minimum(w_min, r - bias)            # -(-inf) = +inf
        row += 1

    # ---- H pass: stacked [max; -min] -> a single roll per row offset.
    stacked = jnp.concatenate([w_max, -w_min], axis=0)  # (2*Pb, HWp)
    acc = stacked
    for s in h_shifts:
        bias = aux_ref[row:row + 1, :]
        acc = jnp.maximum(acc, pltpu.roll(stacked, shift=s, axis=1) + bias)
        row += 1

    # dilation - erosion = max(window) + max(-x over window)
    grad = acc[:pb, :] + acc[pb:, :]

    if interior_row is not None:                        # fused even-strel ZeroPad2d
        grad = grad * aux_ref[interior_row:interior_row + 1, :]

    o_ref[...] = grad.astype(o_ref.dtype)


def morpho_grad2d(x, strel=3, *, block_bytes=_DEFAULT_BLOCK_BYTES):
    """JAX/Pallas equivalent of MorphoGrad2d.forward (grad2d)."""
    n, c, h, w = x.shape
    if strel % 2 == 0 and (h < strel or w < strel):
        # Matches torch: valid max_pool2d needs H, W >= kernel for even strel.
        raise ValueError("even strel requires spatial dims >= strel")

    p = n * c
    hw = h * w
    hwp = _round_up(hw, 128)            # lane-dense output (multiple of 128)

    if x.dtype == jnp.bfloat16 and _bf16_compute_ok():
        compute_dtype = jnp.bfloat16    # max/min exact in bf16; halves vreg use
    else:
        compute_dtype = jnp.float32

    aux, w_shifts, h_shifts, interior_row = _build_aux(
        h, w, hwp, strel, _roll_sense(), compute_dtype)

    p_pad, pb = _plane_tiling(p, hwp * x.dtype.itemsize, block_bytes)

    x2 = x.reshape(p, hw)               # NCHW is contiguous: free reshape
    if p_pad != p or hwp != hw:
        x2 = jnp.pad(x2, ((0, p_pad - p), (0, hwp - hw)))

    grid = (p_pad // pb,)
    kernel = functools.partial(
        _morpho_grad_kernel, w_shifts=w_shifts, h_shifts=h_shifts,
        interior_row=interior_row, compute_dtype=compute_dtype)

    out = pl.pallas_call(
        kernel,
        out_shape=jax.ShapeDtypeStruct((p_pad, hwp), x.dtype),
        grid=grid,
        in_specs=[
            pl.BlockSpec((int(aux.shape[0]), hwp), lambda i: (0, 0)),  # resident
            pl.BlockSpec((pb, hwp), lambda i: (i, 0)),
        ],
        out_specs=pl.BlockSpec((pb, hwp), lambda i: (i, 0)),
        compiler_params=pltpu.CompilerParams(
            dimension_semantics=("parallel",),
            vmem_limit_bytes=_VMEM_LIMIT_BYTES),
    )(aux, x2)

    if p_pad != p or hwp != hw:
        out = out[:p, :hw]
    return out.reshape(n, c, h, w)


# ----------------------------- pure-JAX reference ---------------------------
def _pool2d_ref(x, strel, reduce_fn, pad_val):
    n, c, h, w = x.shape
    if strel % 2 == 1:
        pd = strel // 2
        xp = jnp.pad(x, ((0, 0), (0, 0), (pd, pd), (pd, pd)),
                     constant_values=pad_val)
        h_out, w_out = h, w
    else:
        xp = x
        h_out, w_out = h - strel + 1, w - strel + 1
    acc = xp[:, :, 0:h_out, 0:w_out]
    for di in range(strel):
        for dj in range(strel):
            acc = reduce_fn(acc, xp[:, :, di:di + h_out, dj:dj + w_out])
    if strel % 2 == 0:
        pad = [strel // 2, strel // 2 - 1, strel // 2, strel // 2 - 1]  # l,r,t,b
        acc = jnp.pad(acc, ((0, 0), (0, 0), (pad[2], pad[3]), (pad[0], pad[1])))
    return acc


def _grad2d_ref(x, strel=3):
    dil = _pool2d_ref(x, strel, jnp.maximum, -jnp.inf)
    ero = _pool2d_ref(x, strel, jnp.minimum, jnp.inf)
    return dil - ero


if __name__ == "__main__":
    key = jax.random.PRNGKey(0)
    x = jax.random.normal(key, (2, 4, 16, 16), dtype=jnp.float32)

    out3 = jax.block_until_ready(morpho_grad2d(x, strel=3))
    assert out3.shape == x.shape
    assert jnp.allclose(out3, _grad2d_ref(x, strel=3), atol=1e-5, rtol=1e-5), \
        "strel=3 mismatch"

    out4 = jax.block_until_ready(morpho_grad2d(x, strel=4))
    assert jnp.allclose(out4, _grad2d_ref(x, strel=4), atol=1e-5, rtol=1e-5), \
        "strel=4 mismatch"

    # Non-multiple-of-128 H*W exercises the lane-padding path (10*14 = 140).
    xp_ = jax.random.normal(jax.random.PRNGKey(1), (2, 4, 10, 14), jnp.float32)
    outp = jax.block_until_ready(morpho_grad2d(xp_, strel=3))
    assert jnp.allclose(outp, _grad2d_ref(xp_, strel=3), atol=1e-5, rtol=1e-5), \
        "lane-padded mismatch"

    # Tiny image smaller than the structuring element (odd strel, partial windows).
    xt = jax.random.normal(jax.random.PRNGKey(2), (1, 1, 2, 3), jnp.float32)
    outt = jax.block_until_ready(morpho_grad2d(xt, strel=5))
    assert jnp.allclose(outt, _grad2d_ref(xt, strel=5), atol=1e-5, rtol=1e-5), \
        "tiny-image mismatch"

    # Multi-step grid (forces plane tiling + resident aux across steps).
    xm = jax.random.normal(jax.random.PRNGKey(3), (2, 16, 16, 16), jnp.float32)
    outm = jax.block_until_ready(morpho_grad2d(xm, strel=3, block_bytes=8 * 1024))
    assert jnp.allclose(outm, _grad2d_ref(xm, strel=3), atol=1e-5, rtol=1e-5), \
        "multi-step mismatch"

    # bf16 compute path (max/min exact in bf16; only the final subtract rounds).
    xb = x.astype(jnp.bfloat16)
    outb = jax.block_until_ready(morpho_grad2d(xb, strel=3))
    refb = _grad2d_ref(xb.astype(jnp.float32), strel=3)
    assert jnp.allclose(outb.astype(jnp.float32), refb, atol=0.1), "bf16 mismatch"

    print("KERNEL_OK")
</pallas_src>

<mosaic_0001>
module attributes {stable_mosaic.version = 11 : i64} {
  func.func @probe(%arg0: memref<8x128xf32, #tpu.memory_space<vmem>>, %arg1: memref<8x128xf32, #tpu.memory_space<vmem>>) attributes {dimension_semantics = [], scalar_prefetch = 0 : i64, scratch_operands = 0 : i64, tpu.core_type = #tpu.core_type<tc>} {
    %c0 = arith.constant 0 : index
    %c0_0 = arith.constant 0 : index
    %0 = vector.load %arg0[%c0, %c0_0] : memref<8x128xf32, #tpu.memory_space<vmem>>, vector<8x128xf32>
    %c1_i32 = arith.constant 1 : i32
    %1 = tpu.dynamic_rotate %0 by %c1_i32 dim 1 : vector<8x128xf32>, i32 -> vector<8x128xf32>
    %c0_1 = arith.constant 0 : index
    %c0_2 = arith.constant 0 : index
    %2 = vector.load %arg1[%c0_1, %c0_2] : memref<8x128xf32, #tpu.memory_space<vmem>>, vector<8x128xf32>
    tpu.vector_store %arg1[%c0_1, %c0_2], %1 {strides = array<i32>} : memref<8x128xf32, #tpu.memory_space<vmem>>, vector<8x128xf32>,
    return
  }
}

</mosaic_0001>

<bundles_post_ra>
// kernel: tpu_custom_call.1
= control target key start
LH: loop header
LB: loop body
LE: loop exit
PB: predicated region body
PF: predicated region fallthrough
CT: control target
= control target key end

     0   :  { %6 = vsyncpa [#allocation3], 0  ;;  %s128_s0 = inlined_call_operand.hbm [shape: f32[8,128], index: 0, kind: input, shape index: {}]   ;;  %s129_s1 = inlined_call_operand.hbm [shape: f32[8,128], index: 1, kind: output, shape index: {}]  }
   0x1   :  { %7 = vsyncpa [#allocation4], 0  ;;  %s91_s6 = smov [#allocation2]   ;;  %s43_s10 = scalar_lea.hbm %s128_s0, 128 }
   0x2   :  { %s14_s7 = sshll.u32 %s91_s6, 4  ;;  %p44_p0 = scmp.ne.s32.totalorder %s128_s0, %s43_s10  ;;  %s15_s7 = int_to_ptr.vmem [resolvable:$true] %s14_s7 }
   0x3   :  { %p47_p1 = scmp.lt.u32.totalorder %s43_s10, %s128_s0 }
   0x5   :  { %p49_p2 = pnand %p47_p1, %p44_p0 }
   0x7   :  { %52 = shalt.err (!%p49_p2)
}
   0x8   :  { %s53_s15 = scalar_lea.vmem %s15_s7, 128  ;;  %p58_p4 = scmp.lt.s32.totalorder %s15_s7, %s15_s7 }
   0x9   :  { %p54_p3 = scmp.ne.s32.totalorder %s15_s7, %s53_s15  ;;  %p59_p5 = scmp.lt.s32.totalorder %s53_s15, %s53_s15 }
   0xb   :  { %p60_p6 = por %p59_p5, %p58_p4 }
   0xd   :  { %p61_p7 = pnand %p60_p6, %p54_p3 }
   0xf   :  { %64 = shalt.err (!%p61_p7)
}
  0x10   :  { %17 = dma.hbm_to_vmem [thread:$0]  %s128_s0, 128, %s15_s7, [#allocation3]  }
  0x11   :  { %87 = dma.done.wait [#allocation3], 128  }
  0x12   :  { %88 = vsyncadd [#allocation3], 4294967168  ;;  %v21_v0 = vld [vmem:[#allocation2] sm:$0xff]  ;;  %s92_s18 = smov 1   ;;  %s93_s19 = smov [#allocation5]  }
  0x13   :  { %22 = vrot.lane.b32.xlu0 %v21_v0, %s92_s18  ;;  %s31_s20 = sshll.u32 %s93_s19, 4  ;;  %s32_s20 = int_to_ptr.vmem [resolvable:$true] %s31_s20 }
  0x14   :  { %s65_s21 = scalar_lea.vmem %s32_s20, 128  ;;  %p70_p9 = scmp.lt.s32.totalorder %s32_s20, %s32_s20 }
  0x15   :  { %p66_p8 = scmp.ne.s32.totalorder %s32_s20, %s65_s21  ;;  %p71_p10 = scmp.lt.s32.totalorder %s65_s21, %s65_s21 }
  0x17   :  { %p72_p11 = por %p71_p10, %p70_p9 }
  0x19   :  { %p73_p12 = pnand %p72_p11, %p66_p8 }
  0x85   :  { %v23_v1 = vpop.permute.xlu0 %22 }
  0x86   :  { %24 = vst [vmem:[#allocation5] sm:$0xff] %v23_v1 }
  0x87   :  { %76 = shalt.err (!%p73_p12)
}
  0x88   :  { %s77_s0 = scalar_lea.hbm %s129_s1, 128 }
  0x89   :  { %p78_p13 = scmp.ne.s32.totalorder %s129_s1, %s77_s0  ;;  %p81_p0 = scmp.lt.u32.totalorder %s77_s0, %s129_s1 }
  0x8b   :  { %p83_p1 = pnand %p81_p0, %p78_p13 }
  0x8d   :  { %86 = shalt.err (!%p83_p1)
}
  0x8e   :  { %34 = dma.vmem_to_hbm [thread:$0]  %s32_s20, 128, %s129_s1, [#allocation4]  }
  0x8f   :  { %89 = dma.done.wait [#allocation4], 128  }
  0x90   :  { %90 = vsyncadd [#allocation4], 4294967168 }
  0x91   :  { %38 = vsyncpa [#allocation3], 1 }
  0x92   :  { %39 = vsyncpa [#allocation4], 1 }

</bundles_post_ra>
